<compile_context>
chip_gen: v6e
topology: v6e:2x2x1
jax: 0.10.0
libtpu: 0.0.40
codegen_flags: <defaults>
</compile_context>

<pallas_src>
import numpy as np
import jax
import jax.numpy as jnp
from jax.experimental import pallas as pl
from jax.experimental.pallas import tpu as pltpu  # noqa: F401 (TPU backend assumed)

_LANES = 128


def _round_up(n, m):
    return ((n + m - 1) // m) * m


def _scan_matrix_np(shape, axis):
    """(N, N) float32 0/1 matrix M with flat(cumsum(a, axis)) == flat(a) @ M.

    Row index j = source flat index, column index i = destination flat index
    (row-major flattening of `shape`).  Source j contributes to dest i iff they
    agree on every coordinate except `axis`, where coord_axis(j) <= coord_axis(i).
    """
    n = int(np.prod(shape))
    inner = int(np.prod(shape[axis + 1:])) if axis + 1 < len(shape) else 1
    size = int(shape[axis])
    stride = inner * size
    j = np.arange(n, dtype=np.int64)[:, None]
    i = np.arange(n, dtype=np.int64)[None, :]
    cond = ((j // inner) % size) <= ((i // inner) % size)
    if stride < n:                  # share all coords "outside" the scan axis
        cond = cond & ((j // stride) == (i // stride))
    if inner > 1:                   # share all coords "inside" the scan axis
        cond = cond & ((j % inner) == (i % inner))
    return cond.astype(np.float32)


def _fused_cumsum_kernel(in_ref, rhs_ref, out_ref):
    # Single wide MXU matmul computes every requested cumsum at once.
    out_ref[...] = jnp.dot(
        in_ref[...], rhs_ref[...], preferred_element_type=jnp.float32
    ).astype(out_ref.dtype)


def model_forward(x, y, z):
    """Mirrors Model.forward: six cumsums fused into one Pallas matmul."""
    x = jnp.asarray(x)
    y = jnp.asarray(y)
    z = jnp.asarray(z)
    dtype = x.dtype
    assert jnp.issubdtype(dtype, jnp.floating), "float path only (see TODO)"

    tensors = [x, y, z]
    axes_per_tensor = [(0, 1, 2), (0, 1), (0,)]

    flat_sizes = [int(np.prod(t.shape)) for t in tensors]
    pad_sizes = [_round_up(n, _LANES) for n in flat_sizes]
    in_offsets = [0]
    for p in pad_sizes:
        in_offsets.append(in_offsets[-1] + p)
    w_in = in_offsets[-1]

    # Output slot layout: one lane-padded slot per (tensor, axis) scan.
    out_slots = []
    off = 0
    for t_idx, axes in enumerate(axes_per_tensor):
        for ax in axes:
            out_slots.append((t_idx, ax, off))
            off += pad_sizes[t_idx]
    w_out = off

    # Host-built block-diagonal RHS of 0/1 scan masks (deduplicated by pattern).
    rhs_np = np.zeros((w_in, w_out), dtype=np.float32)
    mask_cache = {}
    for (t_idx, ax, o_off) in out_slots:
        shape = tensors[t_idx].shape
        n = flat_sizes[t_idx]
        inner = int(np.prod(shape[ax + 1:])) if ax + 1 < len(shape) else 1
        key = (n, inner, int(shape[ax]))
        if key not in mask_cache:
            mask_cache[key] = _scan_matrix_np(shape, ax)
        r0 = in_offsets[t_idx]
        rhs_np[r0:r0 + n, o_off:o_off + n] = mask_cache[key]
    rhs = jnp.asarray(rhs_np, dtype=dtype)

    # Pack the three inputs into one lane-dense (1, w_in) row (pure reshape +
    # zero pad; no transposes anywhere).
    parts = []
    for t, n, p in zip(tensors, flat_sizes, pad_sizes):
        flat = t.reshape(1, n)
        if p > n:
            flat = jnp.pad(flat, ((0, 0), (0, p - n)))
        parts.append(flat)
    packed_in = jnp.concatenate(parts, axis=1)

    itemsize = np.dtype(dtype).itemsize
    packed_out = pl.pallas_call(
        _fused_cumsum_kernel,
        out_shape=jax.ShapeDtypeStruct((1, w_out), dtype),
        in_specs=[pl.BlockSpec((1, w_in), lambda: (0, 0)),
                  pl.BlockSpec((w_in, w_out), lambda: (0, 0))],
        out_specs=pl.BlockSpec((1, w_out), lambda: (0, 0)),
        cost_estimate=pl.CostEstimate(
            flops=2 * w_in * w_out,
            transcendentals=0,
            bytes_accessed=(w_in + w_in * w_out + w_out) * itemsize),
    )(packed_in, rhs)

    # Slice the packed row back into the six logical outputs.
    outs = []
    for (t_idx, ax, o_off) in out_slots:
        n = flat_sizes[t_idx]
        outs.append(packed_out[0, o_off:o_off + n].reshape(tensors[t_idx].shape))
    return tuple(outs)


if __name__ == "__main__":
    key = jax.random.PRNGKey(0)
    kx, ky, kz = jax.random.split(key, 3)

    # Small shapes consistent with the pnnx test (x: 3-D, y: 2-D, z: 1-D).
    x = jax.random.uniform(kx, (2, 4, 16), dtype=jnp.float32)
    y = jax.random.uniform(ky, (8, 16), dtype=jnp.float32)
    z = jax.random.uniform(kz, (16,), dtype=jnp.float32)

    forward = jax.jit(model_forward)
    outs = forward(x, y, z)
    outs = jax.block_until_ready(outs)

    # Reference check against jnp.cumsum (same semantics as torch.cumsum).
    refs = (
        jnp.cumsum(x, axis=0), jnp.cumsum(x, axis=1), jnp.cumsum(x, axis=2),
        jnp.cumsum(y, axis=0), jnp.cumsum(y, axis=1),
        jnp.cumsum(z, axis=0),
    )
    for got, ref in zip(outs, refs):
        assert got.shape == ref.shape and got.dtype == ref.dtype
        np.testing.assert_allclose(np.asarray(got), np.asarray(ref),
                                   rtol=1e-5, atol=1e-5)

    print("KERNEL_OK")
</pallas_src>

<mosaic_0001>
module attributes {stable_mosaic.version = 11 : i64} {
  func.func @_fused_cumsum_kernel(%arg0: memref<1x384xf32, #tpu.memory_space<vmem>>, %arg1: memref<384x768xf32, #tpu.memory_space<vmem>>, %arg2: memref<1x768xf32, #tpu.memory_space<vmem>>) attributes {dimension_semantics = [], scalar_prefetch = 0 : i64, scratch_operands = 0 : i64, tpu.core_type = #tpu.core_type<tc>} {
    %c0 = arith.constant 0 : index
    %c0_0 = arith.constant 0 : index
    %0 = vector.load %arg0[%c0, %c0_0] : memref<1x384xf32, #tpu.memory_space<vmem>>, vector<1x384xf32>
    %c0_1 = arith.constant 0 : index
    %c0_2 = arith.constant 0 : index
    %1 = vector.load %arg1[%c0_1, %c0_2] : memref<384x768xf32, #tpu.memory_space<vmem>>, vector<384x768xf32>
    %cst = arith.constant dense<0.000000e+00> : vector<1x768xf32>
    %2 = tpu.matmul %0, %1, %cst {dimension_numbers = #tpu.dot_dimension_numbers<[1], [0], [0], [1], [0, 0, 1, 1], [], []>} : vector<1x384xf32>, vector<384x768xf32>, vector<1x768xf32> -> vector<1x768xf32>
    %c0_3 = arith.constant 0 : index
    %c0_4 = arith.constant 0 : index
    %3 = vector.load %arg2[%c0_3, %c0_4] : memref<1x768xf32, #tpu.memory_space<vmem>>, vector<1x768xf32>
    tpu.vector_store %arg2[%c0_3, %c0_4], %2 {strides = array<i32>} : memref<1x768xf32, #tpu.memory_space<vmem>>, vector<1x768xf32>,
    return
  }
}

</mosaic_0001>

<bundles_post_ra>
// kernel: squeeze.8
= control target key start
LH: loop header
LB: loop body
LE: loop exit
PB: predicated region body
PF: predicated region fallthrough
CT: control target
= control target key end

     0   :  { %s139_s0 = inlined_call_operand.vmem [shape: f32[128], index: 0, kind: input, shape index: {}]   ;;  %s140_s1 = inlined_call_operand.hbm [shape: f32[2,4,16], index: 1, kind: output, shape index: {}]  }
   0x1   :  { %v6_v0 = vld [vmem:[%s139_s0] sm:$0x1] }
   0x2   :  { %7 = vst [vmem:[#allocation3] sm:$0x1] %v6_v0 }
   0x3   :  { %2 = vsyncpa [#allocation1], 0  ;;  %s107_s0 = smov 112   ;;  %s108_s8 = smov 80   ;;  %vm9_vm0 = vcmask 130048  }
   0x4   :  { %s109_s9 = smov 96   ;;  %s110_s10 = smov 64  }
   0x5   :  { %s111_s11 = smov 48   ;;  %s112_s12 = smov 32  }
   0x6   :  { %s113_s13 = smov 16   ;;  %s114_s14 = smov [#allocation0]  }
   0x7   :  { %s71_s15 = sshll.u32 %s114_s14, 4  ;;  %s72_s15 = int_to_ptr.vmem [resolvable:$true] %s71_s15 }
   0x8   :  { %s85_s16 = scalar_lea.vmem %s72_s15, 128  ;;  %p90_p1 = scmp.lt.s32.totalorder %s72_s15, %s72_s15 }
   0x9   :  { %v11_v1 = vld [vmem:[#allocation3] sm:$0x1]   ;;  %p86_p0 = scmp.ne.s32.totalorder %s72_s15, %s85_s16  ;;  %p91_p2 = scmp.lt.s32.totalorder %s85_s16, %s85_s16 }
   0xa   :  { %v23_v2 = vld [vmem:[#allocation3] sm:$0x1]   ;;  %12 = vrot.lane.b32.xlu0 %v11_v1, %s107_s0 }
   0xb   :  { %24 = vrot.lane.b32.xlu1 %v23_v2, %s108_s8  ;;  %v17_v3 = vld [vmem:[#allocation3] sm:$0x1]   ;;  %p92_p3 = por %p91_p2, %p90_p1 }
   0xc   :  { %v29_v4 = vld [vmem:[#allocation3] sm:$0x1]  }
   0xd   :  { %v8_v5 = vld [vmem:[#allocation3] sm:$0x1]   ;;  %p93_p4 = pnand %p92_p3, %p86_p0 }
   0xe   :  { %10 = vst.msk [vmem:[#allocation2] sm:$0x1] %vm9_vm0, %v8_v5   ;;  %18 = vrot.lane.b32.xlu0 %v17_v3, %s109_s9  ;;  %v35_v6 = vld [vmem:[#allocation3] sm:$0x1]  }
   0xf   :  { %30 = vrot.lane.b32.xlu1 %v29_v4, %s110_s10  ;;  %v41_v7 = vld [vmem:[#allocation3] sm:$0x1]  }
  0x10   :  { %v47_v8 = vld [vmem:[#allocation3] sm:$0x1]  }
  0x12   :  { %36 = vrot.lane.b32.xlu0 %v35_v6, %s111_s11 }
  0x13   :  { %42 = vrot.lane.b32.xlu1 %v41_v7, %s112_s12 }
  0x16   :  { %48 = vrot.lane.b32.xlu0 %v47_v8, %s113_s13 }
  0x7c   :  { %v13_v9 = vpop.permute.xlu0 %12  }
  0x7d   :  { %v25_v10 = vpop.permute.xlu1 %24   ;;  %16 = vst.msk [vmem:[#allocation2 + $0x1] sm:$0x1] %vm9_vm0, %v13_v9  }
  0x7e   :  { %28 = vst.msk [vmem:[#allocation2 + $0x3] sm:$0x1] %vm9_vm0, %v25_v10  }
  0x80   :  { %v19_v11 = vpop.permute.xlu0 %18  }
  0x81   :  { %v31_v12 = vpop.permute.xlu1 %30   ;;  %22 = vst.msk [vmem:[#allocation2 + $0x2] sm:$0x1] %vm9_vm0, %v19_v11  }
  0x82   :  { %34 = vst.msk [vmem:[#allocation2 + $0x8] sm:$0x1] %vm9_vm0, %v31_v12  }
  0x84   :  { %v37_v13 = vpop.permute.xlu0 %36  }
  0x85   :  { %v43_v14 = vpop.permute.xlu1 %42   ;;  %40 = vst.msk [vmem:[#allocation2 + $0x9] sm:$0x1] %vm9_vm0, %v37_v13  }
  0x86   :  { %46 = vst.msk [vmem:[#allocation2 + $0xa] sm:$0x1] %vm9_vm0, %v43_v14  }
  0x88   :  { %v49_v15 = vpop.permute.xlu0 %48   ;;  %v57_v16 = vld [vmem:[#allocation2] sm:$0xf] }
  0x89   :  { %52 = vst.msk [vmem:[#allocation2 + $0xb] sm:$0x1] %vm9_vm0, %v49_v15   ;;  %60 = vst [vmem:[#allocation0] sm:$0xf] %v57_v16 }
  0x90   :  { %v62_v17 = vld [vmem:[#allocation2 + $0x8] sm:$0xf] }
  0x91   :  { %66 = vst [vmem:[#allocation0 + $0x4] sm:$0xf] %v62_v17 }
  0x92   :  { %96 = shalt.err (!%p93_p4)
}
  0x93   :  { %74 = dma.vmem_to_hbm [thread:$0]  %s72_s15, 128, %s140_s1, [#allocation1]  }
  0x94   :  { %105 = dma.done.wait [#allocation1], 128  }
  0x95   :  { %106 = vsyncadd [#allocation1], 4294967168 }
  0x96   :  { %76 = vsyncpa [#allocation1], 1 }

// kernel: squeeze.10
= control target key start
LH: loop header
LB: loop body
LE: loop exit
PB: predicated region body
PF: predicated region fallthrough
CT: control target
= control target key end

     0   :  { %s125_s0 = inlined_call_operand.vmem [shape: f32[128], index: 0, kind: input, shape index: {}]   ;;  %s126_s1 = inlined_call_operand.hbm [shape: f32[8,16], index: 1, kind: output, shape index: {}]  }
   0x1   :  { %v6_v0 = vld [vmem:[%s125_s0] sm:$0x1] }
   0x2   :  { %7 = vst [vmem:[#allocation2] sm:$0x1] %v6_v0 }
   0x3   :  { %2 = vsyncpa [#allocation1], 0  ;;  %s93_s0 = smov 112   ;;  %s94_s8 = smov 80   ;;  %vm9_vm0 = vcmask 130048  }
   0x4   :  { %s95_s9 = smov 96   ;;  %s96_s10 = smov 64  }
   0x5   :  { %s97_s11 = smov 48   ;;  %s98_s12 = smov 32  }
   0x6   :  { %s99_s13 = smov 16   ;;  %s100_s14 = smov [#allocation0]  }
   0x7   :  { %s57_s15 = sshll.u32 %s100_s14, 4  ;;  %s58_s15 = int_to_ptr.vmem [resolvable:$true] %s57_s15 }
   0x8   :  { %s71_s16 = scalar_lea.vmem %s58_s15, 128  ;;  %p76_p1 = scmp.lt.s32.totalorder %s58_s15, %s58_s15 }
   0x9   :  { %v11_v1 = vld [vmem:[#allocation2] sm:$0x1]   ;;  %p72_p0 = scmp.ne.s32.totalorder %s58_s15, %s71_s16  ;;  %p77_p2 = scmp.lt.s32.totalorder %s71_s16, %s71_s16 }
   0xa   :  { %v23_v2 = vld [vmem:[#allocation2] sm:$0x1]   ;;  %12 = vrot.lane.b32.xlu0 %v11_v1, %s93_s0 }
   0xb   :  { %24 = vrot.lane.b32.xlu1 %v23_v2, %s94_s8  ;;  %v17_v3 = vld [vmem:[#allocation2] sm:$0x1]   ;;  %p78_p3 = por %p77_p2, %p76_p1 }
   0xc   :  { %v29_v4 = vld [vmem:[#allocation2] sm:$0x1]  }
   0xd   :  { %v8_v5 = vld [vmem:[#allocation2] sm:$0x1]   ;;  %p79_p4 = pnand %p78_p3, %p72_p0 }
   0xe   :  { %10 = vst.msk [vmem:[#allocation0] sm:$0x1] %vm9_vm0, %v8_v5   ;;  %18 = vrot.lane.b32.xlu0 %v17_v3, %s95_s9  ;;  %v35_v6 = vld [vmem:[#allocation2] sm:$0x1]  }
   0xf   :  { %30 = vrot.lane.b32.xlu1 %v29_v4, %s96_s10  ;;  %v41_v7 = vld [vmem:[#allocation2] sm:$0x1]  }
  0x10   :  { %v47_v8 = vld [vmem:[#allocation2] sm:$0x1]  }
  0x12   :  { %36 = vrot.lane.b32.xlu0 %v35_v6, %s97_s11 }
  0x13   :  { %42 = vrot.lane.b32.xlu1 %v41_v7, %s98_s12 }
  0x16   :  { %48 = vrot.lane.b32.xlu0 %v47_v8, %s99_s13 }
  0x7c   :  { %v13_v9 = vpop.permute.xlu0 %12  }
  0x7d   :  { %v25_v10 = vpop.permute.xlu1 %24   ;;  %16 = vst.msk [vmem:[#allocation0 + $0x1] sm:$0x1] %vm9_vm0, %v13_v9  }
  0x7e   :  { %28 = vst.msk [vmem:[#allocation0 + $0x3] sm:$0x1] %vm9_vm0, %v25_v10  }
  0x80   :  { %v19_v11 = vpop.permute.xlu0 %18  }
  0x81   :  { %v31_v12 = vpop.permute.xlu1 %30   ;;  %22 = vst.msk [vmem:[#allocation0 + $0x2] sm:$0x1] %vm9_vm0, %v19_v11  }
  0x82   :  { %34 = vst.msk [vmem:[#allocation0 + $0x4] sm:$0x1] %vm9_vm0, %v31_v12  }
  0x84   :  { %v37_v13 = vpop.permute.xlu0 %36  }
  0x85   :  { %v43_v14 = vpop.permute.xlu1 %42   ;;  %40 = vst.msk [vmem:[#allocation0 + $0x5] sm:$0x1] %vm9_vm0, %v37_v13  }
  0x86   :  { %46 = vst.msk [vmem:[#allocation0 + $0x6] sm:$0x1] %vm9_vm0, %v43_v14  }
  0x88   :  { %v49_v15 = vpop.permute.xlu0 %48  }
  0x89   :  { %52 = vst.msk [vmem:[#allocation0 + $0x7] sm:$0x1] %vm9_vm0, %v49_v15  }
  0x8a   :  { %82 = shalt.err (!%p79_p4)
}
  0x8b   :  { %60 = dma.vmem_to_hbm [thread:$0]  %s58_s15, 128, %s126_s1, [#allocation1]  }
  0x8c   :  { %91 = dma.done.wait [#allocation1], 128  }
  0x8d   :  { %92 = vsyncadd [#allocation1], 4294967168 }
  0x8e   :  { %62 = vsyncpa [#allocation1], 1 }

// kernel: model_forward.1
= control target key start
LH: loop header
LB: loop body
LE: loop exit
PB: predicated region body
PF: predicated region fallthrough
CT: control target
= control target key end

     0   :  { %7 = vsyncpa [#allocation3], 0  ;;  %s840_s9 = smov [#allocation2]   ;;  %s900_s0 = inlined_call_operand.vmem [shape: f32[1,384], index: 0, kind: input, shape index: {}]   ;;  %s901_s1 = inlined_call_operand.hbm [shape: f32[384,768], index: 1, kind: input, shape index: {}]   ;;  %s902_s2 = inlined_call_operand.vmem [shape: f32[1,768], index: 2, kind: output, shape index: {}]  }
   0x1   :  { %s15_s10 = sshll.u32 %s840_s9, 4  ;;  %s16_s10 = int_to_ptr.vmem [resolvable:$true] %s15_s10 }
   0x2   :  { %s826_s11 = scalar_lea.vmem %s16_s10, 36864  ;;  %p831_p1 = scmp.lt.s32.totalorder %s16_s10, %s16_s10 }
   0x3   :  { %p827_p0 = scmp.ne.s32.totalorder %s16_s10, %s826_s11  ;;  %p832_p2 = scmp.lt.s32.totalorder %s826_s11, %s826_s11 }
   0x5   :  { %p833_p3 = por %p832_p2, %p831_p1 }
   0x7   :  { %p834_p4 = pnand %p833_p3, %p827_p0 }
   0x9   :  { %837 = shalt.err (!%p834_p4)
}
   0xa   :  { %s841_s12 = smov 768   ;;  %s842_s13 = smov 48  }
   0xb   :  { %21 = dma.hbm_to_vmem [thread:$0]  %s901_s1, 36864, %s16_s10, [#allocation3], %s841_s12, %s841_s12, %s842_s13  }
   0xc   :  { %838 = dma.done.wait [#allocation3], 36864  }
   0xd   :  { %839 = vsyncadd [#allocation3], 4294930432  ;;  %v843_v0 = vmov 0.0   ;;  %v117_v1 = vld [vmem:[#allocation2 + $0x2d8] sm:$0xff]  ;;  %v116_v3 = vld [vmem:[#allocation2 + $0x2d0] sm:$0xff]  ;;  %v315_v43 = vlaneseq }
   0xe   :  { %465 = vmatprep.mubr.f32.mxu1 %v843_v0  ;;  %v309_v2 = vld [vmem:[#allocation2 + $0x8d8] sm:$0xff]  ;;  %330 = vmatprep.subr.mxu0 %v117_v1  ;;  %v308_v4 = vld [vmem:[#allocation2 + $0x8d0] sm:$0xff]  ;;  %v111_v5 = vld [vmem:[#allocation2 + $0x2a8] sm:$0xff] }
   0xf   :  { %401 = vmatprep.subr.mxu1 %v309_v2  ;;  %v303_v6 = vld [vmem:[#allocation2 + $0x8a8] sm:$0xff]  ;;  %331 = vmatpush1.msra.mxu0 %v116_v3  ;;  %v110_v7 = vld [vmem:[#allocation2 + $0x2a0] sm:$0xff]  ;;  %v105_v9 = vld [vmem:[#allocation2 + $0x278] sm:$0xff]  ;;  %v865_v52 = vshrl.u32 %v315_v43, 7  ;;  %vm805_vm0 = vcmp.lt.s32.totalorder %v315_v43, 768 }
  0x10   :  { %402 = vmatpush1.msra.mxu1 %v308_v4  ;;  %v302_v8 = vld [vmem:[#allocation2 + $0x8a0] sm:$0xff]  ;;  %332 = vmatprep.subr.mxu0 %v111_v5  ;;  %v297_v10 = vld [vmem:[#allocation2 + $0x878] sm:$0xff]  ;;  %v104_v11 = vld [vmem:[#allocation2 + $0x270] sm:$0xff] }
  0x11   :  { %403 = vmatprep.subr.mxu1 %v303_v6  ;;  %v296_v12 = vld [vmem:[#allocation2 + $0x870] sm:$0xff]  ;;  %333 = vmatpush1.msra.mxu0 %v110_v7  ;;  %v99_v13 = vld [vmem:[#allocation2 + $0x248] sm:$0xff]  ;;  %v98_v15 = vld [vmem:[#allocation2 + $0x240] sm:$0xff]  ;;  %v325_v61 = vsub.s32 2, %v865_v52 }
  0x12   :  { %404 = vmatpush1.msra.mxu1 %v302_v8  ;;  %v291_v14 = vld [vmem:[#allocation2 + $0x848] sm:$0xff]  ;;  %334 = vmatprep.subr.mxu0 %v105_v9  ;;  %v290_v16 = vld [vmem:[#allocation2 + $0x840] sm:$0xff]  ;;  %v93_v17 = vld [vmem:[#allocation2 + $0x218] sm:$0xff] }
  0x13   :  { %405 = vmatprep.subr.mxu1 %v297_v10  ;;  %335 = vmatpush1.msra.mxu0 %v104_v11  ;;  %v285_v18 = vld [vmem:[#allocation2 + $0x818] sm:$0xff]  ;;  %v92_v19 = vld [vmem:[#allocation2 + $0x210] sm:$0xff]  ;;  %v87_v21 = vld [vmem:[#allocation2 + $0x1e8] sm:$0xff] }
  0x14   :  { %406 = vmatpush1.msra.mxu1 %v296_v12  ;;  %336 = vmatprep.subr.mxu0 %v99_v13  ;;  %v284_v20 = vld [vmem:[#allocation2 + $0x810] sm:$0xff]  ;;  %v279_v22 = vld [vmem:[#allocation2 + $0x7e8] sm:$0xff]  ;;  %v86_v23 = vld [vmem:[#allocation2 + $0x1e0] sm:$0xff] }
  0x15   :  { %407 = vmatprep.subr.mxu1 %v291_v14  ;;  %337 = vmatpush1.msra.mxu0 %v98_v15  ;;  %v278_v24 = vld [vmem:[#allocation2 + $0x7e0] sm:$0xff]  ;;  %v81_v25 = vld [vmem:[#allocation2 + $0x1b8] sm:$0xff]  ;;  %v80_v27 = vld [vmem:[#allocation2 + $0x1b0] sm:$0xff] }
  0x16   :  { %408 = vmatpush1.msra.mxu1 %v290_v16  ;;  %338 = vmatprep.subr.mxu0 %v93_v17  ;;  %v273_v26 = vld [vmem:[#allocation2 + $0x7b8] sm:$0xff]  ;;  %v272_v28 = vld [vmem:[#allocation2 + $0x7b0] sm:$0xff]  ;;  %v75_v29 = vld [vmem:[#allocation2 + $0x188] sm:$0xff] }
  0x17   :  { %409 = vmatprep.subr.mxu1 %v285_v18  ;;  %339 = vmatpush1.msra.mxu0 %v92_v19  ;;  %v267_v30 = vld [vmem:[#allocation2 + $0x788] sm:$0xff]  ;;  %v74_v31 = vld [vmem:[#allocation2 + $0x180] sm:$0xff]  ;;  %v69_v33 = vld [vmem:[#allocation2 + $0x158] sm:$0xff] }
  0x18   :  { %410 = vmatpush1.msra.mxu1 %v284_v20  ;;  %340 = vmatprep.subr.mxu0 %v87_v21  ;;  %v266_v32 = vld [vmem:[#allocation2 + $0x780] sm:$0xff]  ;;  %v261_v34 = vld [vmem:[#allocation2 + $0x758] sm:$0xff]  ;;  %v68_v35 = vld [vmem:[#allocation2 + $0x150] sm:$0xff] }
  0x19   :  { %411 = vmatprep.subr.mxu1 %v279_v22  ;;  %341 = vmatpush1.msra.mxu0 %v86_v23  ;;  %v260_v36 = vld [vmem:[#allocation2 + $0x750] sm:$0xff]  ;;  %v63_v37 = vld [vmem:[#allocation2 + $0x128] sm:$0xff]  ;;  %v62_v39 = vld [vmem:[#allocation2 + $0x120] sm:$0xff] }
  0x1a   :  { %412 = vmatpush1.msra.mxu1 %v278_v24  ;;  %342 = vmatprep.subr.mxu0 %v81_v25  ;;  %v255_v38 = vld [vmem:[#allocation2 + $0x728] sm:$0xff]  ;;  %v254_v40 = vld [vmem:[#allocation2 + $0x720] sm:$0xff]  ;;  %v57_v41 = vld [vmem:[#allocation2 + $0xf8] sm:$0xff] }
  0x1b   :  { %413 = vmatprep.subr.mxu1 %v273_v26  ;;  %343 = vmatpush1.msra.mxu0 %v80_v27  ;;  %v249_v42 = vld [vmem:[#allocation2 + $0x6f8] sm:$0xff]  ;;  %v56_v44 = vld [vmem:[#allocation2 + $0xf0] sm:$0xff]  ;;  %v51_v46 = vld [vmem:[#allocation2 + $0xc8] sm:$0xff] }
  0x1c   :  { %414 = vmatpush1.msra.mxu1 %v272_v28  ;;  %344 = vmatprep.subr.mxu0 %v75_v29  ;;  %v248_v45 = vld [vmem:[#allocation2 + $0x6f0] sm:$0xff]  ;;  %v243_v47 = vld [vmem:[#allocation2 + $0x6c8] sm:$0xff]  ;;  %v50_v48 = vld [vmem:[#allocation2 + $0xc0] sm:$0xff] }
  0x1d   :  { %415 = vmatprep.subr.mxu1 %v267_v30  ;;  %345 = vmatpush1.msra.mxu0 %v74_v31  ;;  %v242_v49 = vld [vmem:[#allocation2 + $0x6c0] sm:$0xff]  ;;  %v45_v50 = vld [vmem:[#allocation2 + $0x98] sm:$0xff]  ;;  %v44_v53 = vld [vmem:[#allocation2 + $0x90] sm:$0xff] }
  0x1e   :  { %416 = vmatpush1.msra.mxu1 %v266_v32  ;;  %346 = vmatprep.subr.mxu0 %v69_v33  ;;  %v237_v51 = vld [vmem:[#allocation2 + $0x698] sm:$0xff]  ;;  %v236_v54 = vld [vmem:[#allocation2 + $0x690] sm:$0xff]  ;;  %v39_v55 = vld [vmem:[#allocation2 + $0x68] sm:$0xff] }
  0x1f   :  { %417 = vmatprep.subr.mxu1 %v261_v34  ;;  %347 = vmatpush1.msra.mxu0 %v68_v35  ;;  %v231_v56 = vld [vmem:[#allocation2 + $0x668] sm:$0xff]  ;;  %v38_v57 = vld [vmem:[#allocation2 + $0x60] sm:$0xff]  ;;  %v33_v59 = vld [vmem:[#allocation2 + $0x38] sm:$0xff] }
  0x20   :  { %418 = vmatpush1.msra.mxu1 %v260_v36  ;;  %348 = vmatprep.subr.mxu0 %v63_v37  ;;  %v230_v58 = vld [vmem:[#allocation2 + $0x660] sm:$0xff]  ;;  %v225_v60 = vld [vmem:[#allocation2 + $0x638] sm:$0xff]  ;;  %v32_v62 = vld [vmem:[#allocation2 + $0x30] sm:$0xff] }
  0x21   :  { %419 = vmatprep.subr.mxu1 %v255_v38  ;;  %349 = vmatpush1.msra.mxu0 %v62_v39  ;;  %v224_v63 = vld [vmem:[#allocation2 + $0x630] sm:$0xff]  ;;  %v871_v1 = vld [vmem:[%s900_s0] sm:$0x7]  ;;  %v27_v2 = vld [vmem:[#allocation2 + $0x8] sm:$0xff] }
  0x22   :  { %420 = vmatpush1.msra.mxu1 %v254_v40  ;;  %350 = vmatprep.subr.mxu0 %v57_v41  ;;  %v219_v3 = vld [vmem:[#allocation2 + $0x608] sm:$0xff]  ;;  %v26_v4 = vld [vmem:[#allocation2] sm:$0xff]  ;;  %v213_v6 = vld [vmem:[#allocation2 + $0x5d8] sm:$0xff]  ;;  %v874_v8 = vrot.slane %v871_v1, %v325_v61 }
  0x23   :  { %421 = vmatprep.subr.mxu1 %v249_v42  ;;  %351 = vmatpush1.msra.mxu0 %v56_v44  ;;  %v218_v5 = vld [vmem:[#allocation2 + $0x600] sm:$0xff]  ;;  %v119_v7 = vld [vmem:[#allocation2 + $0x2e8] sm:$0xff]  ;;  %v212_v9 = vld [vmem:[#allocation2 + $0x5d0] sm:$0xff] }
  0x24   :  { %422 = vmatpush1.msra.mxu1 %v248_v45  ;;  %352 = vmatprep.subr.mxu0 %v51_v46  ;;  %v118_v10 = vld [vmem:[#allocation2 + $0x2e0] sm:$0xff]  ;;  %v207_v11 = vld [vmem:[#allocation2 + $0x5a8] sm:$0xff]  ;;  %v113_v12 = vld [vmem:[#allocation2 + $0x2b8] sm:$0xff] }
  0x25   :  { %423 = vmatprep.subr.mxu1 %v243_v47  ;;  %353 = vmatpush1.msra.mxu0 %v50_v48  ;;  %v206_v13 = vld [vmem:[#allocation2 + $0x5a0] sm:$0xff]  ;;  %v112_v14 = vld [vmem:[#allocation2 + $0x2b0] sm:$0xff]  ;;  %v201_v15 = vld [vmem:[#allocation2 + $0x578] sm:$0xff] }
  0x26   :  { %424 = vmatpush1.msra.mxu1 %v242_v49  ;;  %354 = vmatprep.subr.mxu0 %v45_v50  ;;  %v107_v16 = vld [vmem:[#allocation2 + $0x288] sm:$0xff]  ;;  %v200_v17 = vld [vmem:[#allocation2 + $0x570] sm:$0xff]  ;;  %v106_v18 = vld [vmem:[#allocation2 + $0x280] sm:$0xff] }
  0x27   :  { %425 = vmatprep.subr.mxu1 %v237_v51  ;;  %355 = vmatpush1.msra.mxu0 %v44_v53  ;;  %v195_v19 = vld [vmem:[#allocation2 + $0x548] sm:$0xff]  ;;  %v101_v20 = vld [vmem:[#allocation2 + $0x258] sm:$0xff]  ;;  %v194_v21 = vld [vmem:[#allocation2 + $0x540] sm:$0xff] }
  0x28   :  { %426 = vmatpush1.msra.mxu1 %v236_v54  ;;  %356 = vmatprep.subr.mxu0 %v39_v55  ;;  %v100_v22 = vld [vmem:[#allocation2 + $0x250] sm:$0xff]  ;;  %v189_v23 = vld [vmem:[#allocation2 + $0x518] sm:$0xff]  ;;  %v95_v24 = vld [vmem:[#allocation2 + $0x228] sm:$0xff] }
  0x29   :  { %427 = vmatprep.subr.mxu1 %v231_v56  ;;  %357 = vmatpush1.msra.mxu0 %v38_v57  ;;  %v188_v25 = vld [vmem:[#allocation2 + $0x510] sm:$0xff]  ;;  %v94_v26 = vld [vmem:[#allocation2 + $0x220] sm:$0xff]  ;;  %v183_v27 = vld [vmem:[#allocation2 + $0x4e8] sm:$0xff] }
  0x2a   :  { %428 = vmatpush1.msra.mxu1 %v230_v58  ;;  %358 = vmatprep.subr.mxu0 %v33_v59  ;;  %v89_v28 = vld [vmem:[#allocation2 + $0x1f8] sm:$0xff]  ;;  %v182_v29 = vld [vmem:[#allocation2 + $0x4e0] sm:$0xff]  ;;  %v88_v30 = vld [vmem:[#allocation2 + $0x1f0] sm:$0xff] }
  0x2b   :  { %429 = vmatprep.subr.mxu1 %v225_v60  ;;  %359 = vmatpush1.msra.mxu0 %v32_v62  ;;  %v177_v31 = vld [vmem:[#allocation2 + $0x4b8] sm:$0xff]  ;;  %v83_v32 = vld [vmem:[#allocation2 + $0x1c8] sm:$0xff]  ;;  %v176_v33 = vld [vmem:[#allocation2 + $0x4b0] sm:$0xff] }
  0x2c   :  { %430 = vmatpush1.msra.mxu1 %v224_v63  ;;  %360 = vmatprep.subr.mxu0 %v27_v2  ;;  %v82_v34 = vld [vmem:[#allocation2 + $0x1c0] sm:$0xff]  ;;  %v171_v35 = vld [vmem:[#allocation2 + $0x488] sm:$0xff]  ;;  %v77_v36 = vld [vmem:[#allocation2 + $0x198] sm:$0xff]  ;;  %v321_v2 = vsub.s32 1, %v865_v52 }
  0x2d   :  { %431 = vmatprep.subr.mxu1 %v219_v3  ;;  %361 = vmatpush1.msra.mxu0 %v26_v4  ;;  %v170_v37 = vld [vmem:[#allocation2 + $0x480] sm:$0xff]  ;;  %v76_v38 = vld [vmem:[#allocation2 + $0x190] sm:$0xff]  ;;  %v165_v39 = vld [vmem:[#allocation2 + $0x458] sm:$0xff] }
  0x2e   :  { %432 = vmatpush1.msra.mxu1 %v218_v5  ;;  %362 = vmatprep.subr.mxu0 %v213_v6  ;;  %v71_v40 = vld [vmem:[#allocation2 + $0x168] sm:$0xff]  ;;  %v164_v41 = vld [vmem:[#allocation2 + $0x450] sm:$0xff]  ;;  %v70_v42 = vld [vmem:[#allocation2 + $0x160] sm:$0xff]  ;;  %v317_v5 = vsub.s32 0, %v865_v52 }
  0x2f   :  { %472 = vmatprep.subr.mxu1 %v119_v7  ;;  %363 = vmatpush2.msra.mxu0 %v212_v9  ;;  %v159_v44 = vld [vmem:[#allocation2 + $0x428] sm:$0xff]  ;;  %v65_v45 = vld [vmem:[#allocation2 + $0x138] sm:$0xff]  ;;  %v158_v46 = vld [vmem:[#allocation2 + $0x420] sm:$0xff] }
  0x30   :  { %466 = vmatmul.mubr.f32.vlgmr.msra.gmra.mxu1 %v874_v8  ;;  %364 = vmatprep.subr.mxu0 %v207_v11  ;;  %v64_v47 = vld [vmem:[#allocation2 + $0x130] sm:$0xff]  ;;  %v153_v48 = vld [vmem:[#allocation2 + $0x3f8] sm:$0xff]  ;;  %v59_v49 = vld [vmem:[#allocation2 + $0x108] sm:$0xff] }
  0x31   :  { %473 = vmatpush1.msra.mxu1 %v118_v10  ;;  %365 = vmatpush2.msra.mxu0 %v206_v13  ;;  %v152_v50 = vld [vmem:[#allocation2 + $0x3f0] sm:$0xff]  ;;  %v58_v51 = vld [vmem:[#allocation2 + $0x100] sm:$0xff]  ;;  %v147_v53 = vld [vmem:[#allocation2 + $0x3c8] sm:$0xff]  ;;  %v880_v13 = vrot.slane %v871_v1, %v321_v2 }
  0x32   :  { %474 = vmatprep.subr.mxu1 %v113_v12  ;;  %366 = vmatprep.subr.mxu0 %v201_v15  ;;  %v53_v54 = vld [vmem:[#allocation2 + $0xd8] sm:$0xff]  ;;  %v146_v55 = vld [vmem:[#allocation2 + $0x3c0] sm:$0xff]  ;;  %v52_v56 = vld [vmem:[#allocation2 + $0xd0] sm:$0xff]  ;;  %v883_v15 = vrot.slane %v871_v1, %v317_v5 }
  0x33   :  { %475 = vmatpush1.msra.mxu1 %v112_v14  ;;  %367 = vmatpush2.msra.mxu0 %v200_v17  ;;  %v141_v57 = vld [vmem:[#allocation2 + $0x398] sm:$0xff]  ;;  %v47_v58 = vld [vmem:[#allocation2 + $0xa8] sm:$0xff]  ;;  %v140_v59 = vld [vmem:[#allocation2 + $0x390] sm:$0xff] }
  0x34   :  { %476 = vmatprep.subr.mxu1 %v107_v16  ;;  %368 = vmatprep.subr.mxu0 %v195_v19  ;;  %v46_v60 = vld [vmem:[#allocation2 + $0xa0] sm:$0xff]  ;;  %v135_v61 = vld [vmem:[#allocation2 + $0x368] sm:$0xff]  ;;  %v41_v62 = vld [vmem:[#allocation2 + $0x78] sm:$0xff] }
  0x35   :  { %477 = vmatpush1.msra.mxu1 %v106_v18  ;;  %369 = vmatpush2.msra.mxu0 %v194_v21  ;;  %v134_v63 = vld [vmem:[#allocation2 + $0x360] sm:$0xff]  ;;  %v40_v3 = vld [vmem:[#allocation2 + $0x70] sm:$0xff]  ;;  %v129_v4 = vld [vmem:[#allocation2 + $0x338] sm:$0xff] }
  0x36   :  { %478 = vmatprep.subr.mxu1 %v101_v20  ;;  %370 = vmatprep.subr.mxu0 %v189_v23  ;;  %v35_v6 = vld [vmem:[#allocation2 + $0x48] sm:$0xff]  ;;  %v128_v7 = vld [vmem:[#allocation2 + $0x330] sm:$0xff]  ;;  %v34_v9 = vld [vmem:[#allocation2 + $0x40] sm:$0xff] }
  0x37   :  { %479 = vmatpush1.msra.mxu1 %v100_v22  ;;  %371 = vmatpush2.msra.mxu0 %v188_v25  ;;  %v123_v10 = vld [vmem:[#allocation2 + $0x308] sm:$0xff]  ;;  %v29_v11 = vld [vmem:[#allocation2 + $0x18] sm:$0xff]  ;;  %v122_v12 = vld [vmem:[#allocation2 + $0x300] sm:$0xff] }
  0x38   :  { %480 = vmatprep.subr.mxu1 %v95_v24  ;;  %372 = vmatprep.subr.mxu0 %v183_v27  ;;  %v28_v14 = vld [vmem:[#allocation2 + $0x10] sm:$0xff]  ;;  %v215_v16 = vld [vmem:[#allocation2 + $0x5e8] sm:$0xff]  ;;  %v214_v18 = vld [vmem:[#allocation2 + $0x5e0] sm:$0xff] }
  0x39   :  { %481 = vmatpush1.msra.mxu1 %v94_v26  ;;  %373 = vmatpush2.msra.mxu0 %v182_v29  ;;  %v311_v17 = vld [vmem:[#allocation2 + $0x8e8] sm:$0xff]  ;;  %v310_v19 = vld [vmem:[#allocation2 + $0x8e0] sm:$0xff]  ;;  %v209_v20 = vld [vmem:[#allocation2 + $0x5b8] sm:$0xff] }
  0x3a   :  { %482 = vmatprep.subr.mxu1 %v89_v28  ;;  %374 = vmatprep.subr.mxu0 %v177_v31  ;;  %v305_v21 = vld [vmem:[#allocation2 + $0x8b8] sm:$0xff]  ;;  %v208_v22 = vld [vmem:[#allocation2 + $0x5b0] sm:$0xff]  ;;  %v203_v23 = vld [vmem:[#allocation2 + $0x588] sm:$0xff] }
  0x3b   :  { %483 = vmatpush1.msra.mxu1 %v88_v30  ;;  %375 = vmatpush2.msra.mxu0 %v176_v33  ;;  %v304_v1 = vld [vmem:[#allocation2 + $0x8b0] sm:$0xff]  ;;  %v299_v24 = vld [vmem:[#allocation2 + $0x888] sm:$0xff]  ;;  %v202_v25 = vld [vmem:[#allocation2 + $0x580] sm:$0xff] }
  0x3c   :  { %484 = vmatprep.subr.mxu1 %v83_v32  ;;  %376 = vmatprep.subr.mxu0 %v171_v35  ;;  %v298_v26 = vld [vmem:[#allocation2 + $0x880] sm:$0xff]  ;;  %v197_v27 = vld [vmem:[#allocation2 + $0x558] sm:$0xff]  ;;  %v196_v29 = vld [vmem:[#allocation2 + $0x550] sm:$0xff] }
  0x3d   :  { %485 = vmatpush1.msra.mxu1 %v82_v34  ;;  %377 = vmatpush2.msra.mxu0 %v170_v37  ;;  %v293_v28 = vld [vmem:[#allocation2 + $0x858] sm:$0xff]  ;;  %v292_v30 = vld [vmem:[#allocation2 + $0x850] sm:$0xff]  ;;  %v191_v31 = vld [vmem:[#allocation2 + $0x528] sm:$0xff] }
  0x3e   :  { %486 = vmatprep.subr.mxu1 %v77_v36  ;;  %378 = vmatprep.subr.mxu0 %v165_v39  ;;  %v287_v32 = vld [vmem:[#allocation2 + $0x828] sm:$0xff]  ;;  %v190_v33 = vld [vmem:[#allocation2 + $0x520] sm:$0xff]  ;;  %v185_v35 = vld [vmem:[#allocation2 + $0x4f8] sm:$0xff] }
  0x3f   :  { %487 = vmatpush1.msra.mxu1 %v76_v38  ;;  %379 = vmatpush2.msra.mxu0 %v164_v41  ;;  %v286_v34 = vld [vmem:[#allocation2 + $0x820] sm:$0xff]  ;;  %v281_v36 = vld [vmem:[#allocation2 + $0x7f8] sm:$0xff]  ;;  %v184_v37 = vld [vmem:[#allocation2 + $0x4f0] sm:$0xff] }
  0x40   :  { %488 = vmatprep.subr.mxu1 %v71_v40  ;;  %380 = vmatprep.subr.mxu0 %v159_v44  ;;  %v280_v38 = vld [vmem:[#allocation2 + $0x7f0] sm:$0xff]  ;;  %v179_v39 = vld [vmem:[#allocation2 + $0x4c8] sm:$0xff]  ;;  %v178_v41 = vld [vmem:[#allocation2 + $0x4c0] sm:$0xff] }
  0x41   :  { %489 = vmatpush1.msra.mxu1 %v70_v42  ;;  %381 = vmatpush2.msra.mxu0 %v158_v46  ;;  %v275_v40 = vld [vmem:[#allocation2 + $0x7c8] sm:$0xff]  ;;  %v274_v42 = vld [vmem:[#allocation2 + $0x7c0] sm:$0xff]  ;;  %v173_v44 = vld [vmem:[#allocation2 + $0x498] sm:$0xff] }
  0x42   :  { %490 = vmatprep.subr.mxu1 %v65_v45  ;;  %382 = vmatprep.subr.mxu0 %v153_v48  ;;  %v269_v45 = vld [vmem:[#allocation2 + $0x798] sm:$0xff]  ;;  %v172_v46 = vld [vmem:[#allocation2 + $0x490] sm:$0xff]  ;;  %v167_v48 = vld [vmem:[#allocation2 + $0x468] sm:$0xff] }
  0x43   :  { %491 = vmatpush1.msra.mxu1 %v64_v47  ;;  %383 = vmatpush2.msra.mxu0 %v152_v50  ;;  %v268_v47 = vld [vmem:[#allocation2 + $0x790] sm:$0xff]  ;;  %v166_v50 = vld [vmem:[#allocation2 + $0x460] sm:$0xff] }
  0x44   :  { %492 = vmatprep.subr.mxu1 %v59_v49  ;;  %384 = vmatprep.subr.mxu0 %v147_v53  ;;  %v263_v49 = vld [vmem:[#allocation2 + $0x768] sm:$0xff]  ;;  %v161_v53 = vld [vmem:[#allocation2 + $0x438] sm:$0xff]  ;;  %v244_v2 = vld [vmem:[#allocation2 + $0x6d0] sm:$0xff] }
  0x45   :  { %493 = vmatpush1.msra.mxu1 %v58_v51  ;;  %385 = vmatpush2.msra.mxu0 %v146_v55  ;;  %v262_v51 = vld [vmem:[#allocation2 + $0x760] sm:$0xff]  ;;  %v160_v55 = vld [vmem:[#allocation2 + $0x430] sm:$0xff] }
  0x46   :  { %494 = vmatprep.subr.mxu1 %v53_v54  ;;  %386 = vmatprep.subr.mxu0 %v141_v57  ;;  %v257_v54 = vld [vmem:[#allocation2 + $0x738] sm:$0xff]  ;;  %v155_v57 = vld [vmem:[#allocation2 + $0x408] sm:$0xff]  ;;  %v142_v5 = vld [vmem:[#allocation2 + $0x3a0] sm:$0xff] }
  0x47   :  { %495 = vmatpush1.msra.mxu1 %v52_v56  ;;  %387 = vmatpush2.msra.mxu0 %v140_v59  ;;  %v256_v56 = vld [vmem:[#allocation2 + $0x730] sm:$0xff]  ;;  %v154_v59 = vld [vmem:[#allocation2 + $0x400] sm:$0xff] }
  0x48   :  { %496 = vmatprep.subr.mxu1 %v47_v58  ;;  %388 = vmatprep.subr.mxu0 %v135_v61  ;;  %v251_v58 = vld [vmem:[#allocation2 + $0x708] sm:$0xff]  ;;  %v149_v61 = vld [vmem:[#allocation2 + $0x3d8] sm:$0xff] }
  0x49   :  { %497 = vmatpush1.msra.mxu1 %v46_v60  ;;  %389 = vmatpush2.msra.mxu0 %v134_v63  ;;  %v250_v60 = vld [vmem:[#allocation2 + $0x700] sm:$0xff]  ;;  %v148_v63 = vld [vmem:[#allocation2 + $0x3d0] sm:$0xff] }
  0x4a   :  { %498 = vmatprep.subr.mxu1 %v41_v62  ;;  %390 = vmatprep.subr.mxu0 %v129_v4  ;;  %v245_v62 = vld [vmem:[#allocation2 + $0x6d8] sm:$0xff]  ;;  %v239_v4 = vld [vmem:[#allocation2 + $0x6a8] sm:$0xff] }
  0x4b   :  { %499 = vmatpush1.msra.mxu1 %v40_v3  ;;  %391 = vmatpush2.msra.mxu0 %v128_v7  ;;  %v143_v3 = vld [vmem:[#allocation2 + $0x3a8] sm:$0xff]  ;;  %v137_v7 = vld [vmem:[#allocation2 + $0x378] sm:$0xff] }
  0x4c   :  { %500 = vmatprep.subr.mxu1 %v35_v6  ;;  %392 = vmatprep.subr.mxu0 %v123_v10  ;;  %v238_v6 = vld [vmem:[#allocation2 + $0x6a0] sm:$0xff]  ;;  %v136_v10 = vld [vmem:[#allocation2 + $0x370] sm:$0xff] }
  0x4d   :  { %501 = vmatpush1.msra.mxu1 %v34_v9  ;;  %393 = vmatpush2.msra.mxu0 %v122_v12  ;;  %v233_v9 = vld [vmem:[#allocation2 + $0x678] sm:$0xff]  ;;  %v131_v12 = vld [vmem:[#allocation2 + $0x348] sm:$0xff] }
  0x4e   :  { %502 = vmatprep.subr.mxu1 %v29_v11  ;;  %394 = vmatprep.mubr.f32.mxu0 %v880_v13  ;;  %v232_v11 = vld [vmem:[#allocation2 + $0x670] sm:$0xff] }
  0x4f   :  { %503 = vmatpush1.msra.mxu1 %v28_v14  ;;  %395 = vmatmul.mubr.f32.vlgmr.msra.gmra.mxu0 %v883_v15  ;;  %v227_v14 = vld [vmem:[#allocation2 + $0x648] sm:$0xff] }
  0x50   :  { %504 = vmatprep.subr.mxu1 %v215_v16  ;;  %543 = vmatprep.subr.mxu0 %v311_v17  ;;  %v130_v16 = vld [vmem:[#allocation2 + $0x340] sm:$0xff] }
  0x51   :  { %505 = vmatpush2.msra.mxu1 %v214_v18  ;;  %544 = vmatpush1.msra.mxu0 %v310_v19  ;;  %v226_v17 = vld [vmem:[#allocation2 + $0x640] sm:$0xff]  ;;  %v125_v18 = vld [vmem:[#allocation2 + $0x318] sm:$0xff] }
  0x52   :  { %506 = vmatprep.subr.mxu1 %v209_v20  ;;  %545 = vmatprep.subr.mxu0 %v305_v21  ;;  %v221_v19 = vld [vmem:[#allocation2 + $0x618] sm:$0xff]  ;;  %v124_v20 = vld [vmem:[#allocation2 + $0x310] sm:$0xff] }
  0x53   :  { %507 = vmatpush2.msra.mxu1 %v208_v22  ;;  %546 = vmatpush1.msra.mxu0 %v304_v1  ;;  %v220_v21 = vld [vmem:[#allocation2 + $0x610] sm:$0xff]  ;;  %v121_v22 = vld [vmem:[#allocation2 + $0x2f8] sm:$0xff] }
  0x54   :  { %508 = vmatprep.subr.mxu1 %v203_v23  ;;  %547 = vmatprep.subr.mxu0 %v299_v24  ;;  %v120_v1 = vld [vmem:[#allocation2 + $0x2f0] sm:$0xff]  ;;  %v313_v23 = vld [vmem:[#allocation2 + $0x8f8] sm:$0xff]  ;;  %v115_v24 = vld [vmem:[#allocation2 + $0x2c8] sm:$0xff] }
  0x55   :  { %509 = vmatpush2.msra.mxu1 %v202_v25  ;;  %548 = vmatpush1.msra.mxu0 %v298_v26  ;;  %v312_v25 = vld [vmem:[#allocation2 + $0x8f0] sm:$0xff]  ;;  %v114_v26 = vld [vmem:[#allocation2 + $0x2c0] sm:$0xff] }
  0x56   :  { %510 = vmatprep.subr.mxu1 %v197_v27  ;;  %549 = vmatprep.subr.mxu0 %v293_v28  ;;  %v307_v27 = vld [vmem:[#allocation2 + $0x8c8] sm:$0xff]  ;;  %v109_v28 = vld [vmem:[#allocation2 + $0x298] sm:$0xff] }
  0x57   :  { %511 = vmatpush2.msra.mxu1 %v196_v29  ;;  %550 = vmatpush1.msra.mxu0 %v292_v30  ;;  %v306_v29 = vld [vmem:[#allocation2 + $0x8c0] sm:$0xff]  ;;  %v108_v30 = vld [vmem:[#allocation2 + $0x290] sm:$0xff] }
  0x58   :  { %512 = vmatprep.subr.mxu1 %v191_v31  ;;  %551 = vmatprep.subr.mxu0 %v287_v32  ;;  %v301_v31 = vld [vmem:[#allocation2 + $0x898] sm:$0xff]  ;;  %v103_v32 = vld [vmem:[#allocation2 + $0x268] sm:$0xff] }
  0x59   :  { %513 = vmatpush2.msra.mxu1 %v190_v33  ;;  %552 = vmatpush1.msra.mxu0 %v286_v34  ;;  %v300_v33 = vld [vmem:[#allocation2 + $0x890] sm:$0xff]  ;;  %v102_v34 = vld [vmem:[#allocation2 + $0x260] sm:$0xff] }
  0x5a   :  { %514 = vmatprep.subr.mxu1 %v185_v35  ;;  %553 = vmatprep.subr.mxu0 %v281_v36  ;;  %v295_v35 = vld [vmem:[#allocation2 + $0x868] sm:$0xff]  ;;  %v97_v36 = vld [vmem:[#allocation2 + $0x238] sm:$0xff] }
  0x5b   :  { %515 = vmatpush2.msra.mxu1 %v184_v37  ;;  %554 = vmatpush1.msra.mxu0 %v280_v38  ;;  %v294_v37 = vld [vmem:[#allocation2 + $0x860] sm:$0xff]  ;;  %v96_v38 = vld [vmem:[#allocation2 + $0x230] sm:$0xff] }
  0x5c   :  { %516 = vmatprep.subr.mxu1 %v179_v39  ;;  %555 = vmatprep.subr.mxu0 %v275_v40  ;;  %v289_v39 = vld [vmem:[#allocation2 + $0x838] sm:$0xff]  ;;  %v91_v40 = vld [vmem:[#allocation2 + $0x208] sm:$0xff] }
  0x5d   :  { %517 = vmatpush2.msra.mxu1 %v178_v41  ;;  %556 = vmatpush1.msra.mxu0 %v274_v42  ;;  %v288_v41 = vld [vmem:[#allocation2 + $0x830] sm:$0xff]  ;;  %v90_v42 = vld [vmem:[#allocation2 + $0x200] sm:$0xff] }
  0x5e   :  { %518 = vmatprep.subr.mxu1 %v173_v44  ;;  %557 = vmatprep.subr.mxu0 %v269_v45  ;;  %v283_v44 = vld [vmem:[#allocation2 + $0x808] sm:$0xff]  ;;  %v85_v45 = vld [vmem:[#allocation2 + $0x1d8] sm:$0xff] }
  0x5f   :  { %519 = vmatpush2.msra.mxu1 %v172_v46  ;;  %558 = vmatpush1.msra.mxu0 %v268_v47  ;;  %v282_v46 = vld [vmem:[#allocation2 + $0x800] sm:$0xff]  ;;  %v84_v47 = vld [vmem:[#allocation2 + $0x1d0] sm:$0xff] }
  0x60   :  { %520 = vmatprep.subr.mxu1 %v167_v48  ;;  %559 = vmatprep.subr.mxu0 %v263_v49  ;;  %v277_v48 = vld [vmem:[#allocation2 + $0x7d8] sm:$0xff]  ;;  %v79_v49 = vld [vmem:[#allocation2 + $0x1a8] sm:$0xff] }
  0x61   :  { %521 = vmatpush2.msra.mxu1 %v166_v50  ;;  %560 = vmatpush1.msra.mxu0 %v262_v51  ;;  %v276_v50 = vld [vmem:[#allocation2 + $0x7d0] sm:$0xff]  ;;  %v78_v51 = vld [vmem:[#allocation2 + $0x1a0] sm:$0xff] }
  0x62   :  { %522 = vmatprep.subr.mxu1 %v161_v53  ;;  %561 = vmatprep.subr.mxu0 %v257_v54  ;;  %v271_v53 = vld [vmem:[#allocation2 + $0x7a8] sm:$0xff]  ;;  %v73_v54 = vld [vmem:[#allocation2 + $0x178] sm:$0xff] }
  0x63   :  { %523 = vmatpush2.msra.mxu1 %v160_v55  ;;  %562 = vmatpush1.msra.mxu0 %v256_v56  ;;  %v270_v55 = vld [vmem:[#allocation2 + $0x7a0] sm:$0xff]  ;;  %v72_v56 = vld [vmem:[#allocation2 + $0x170] sm:$0xff] }
  0x64   :  { %524 = vmatprep.subr.mxu1 %v155_v57  ;;  %563 = vmatprep.subr.mxu0 %v251_v58  ;;  %v265_v57 = vld [vmem:[#allocation2 + $0x778] sm:$0xff]  ;;  %v67_v58 = vld [vmem:[#allocation2 + $0x148] sm:$0xff] }
  0x65   :  { %525 = vmatpush2.msra.mxu1 %v154_v59  ;;  %564 = vmatpush1.msra.mxu0 %v250_v60  ;;  %v264_v59 = vld [vmem:[#allocation2 + $0x770] sm:$0xff]  ;;  %v66_v60 = vld [vmem:[#allocation2 + $0x140] sm:$0xff] }
  0x66   :  { %526 = vmatprep.subr.mxu1 %v149_v61  ;;  %565 = vmatprep.subr.mxu0 %v245_v62  ;;  %v259_v61 = vld [vmem:[#allocation2 + $0x748] sm:$0xff]  ;;  %v61_v62 = vld [vmem:[#allocation2 + $0x118] sm:$0xff] }
  0x67   :  { %527 = vmatpush2.msra.mxu1 %v148_v63  ;;  %566 = vmatpush1.msra.mxu0 %v244_v2  ;;  %v258_v63 = vld [vmem:[#allocation2 + $0x740] sm:$0xff]  ;;  %v60_v2 = vld [vmem:[#allocation2 + $0x110] sm:$0xff] }
  0x68   :  { %528 = vmatprep.subr.mxu1 %v143_v3  ;;  %567 = vmatprep.subr.mxu0 %v239_v4  ;;  %v253_v3 = vld [vmem:[#allocation2 + $0x718] sm:$0xff]  ;;  %v55_v4 = vld [vmem:[#allocation2 + $0xe8] sm:$0xff] }
  0x69   :  { %529 = vmatpush2.msra.mxu1 %v142_v5  ;;  %568 = vmatpush1.msra.mxu0 %v238_v6  ;;  %v252_v5 = vld [vmem:[#allocation2 + $0x710] sm:$0xff]  ;;  %v54_v6 = vld [vmem:[#allocation2 + $0xe0] sm:$0xff] }
  0x6a   :  { %530 = vmatprep.subr.mxu1 %v137_v7  ;;  %569 = vmatprep.subr.mxu0 %v233_v9  ;;  %v247_v7 = vld [vmem:[#allocation2 + $0x6e8] sm:$0xff]  ;;  %v49_v9 = vld [vmem:[#allocation2 + $0xb8] sm:$0xff] }
  0x6b   :  { %531 = vmatpush2.msra.mxu1 %v136_v10  ;;  %570 = vmatpush1.msra.mxu0 %v232_v11  ;;  %v246_v10 = vld [vmem:[#allocation2 + $0x6e0] sm:$0xff]  ;;  %v48_v11 = vld [vmem:[#allocation2 + $0xb0] sm:$0xff] }
  0x6c   :  { %532 = vmatprep.subr.mxu1 %v131_v12  ;;  %571 = vmatprep.subr.mxu0 %v227_v14  ;;  %v241_v12 = vld [vmem:[#allocation2 + $0x6b8] sm:$0xff]  ;;  %v43_v14 = vld [vmem:[#allocation2 + $0x88] sm:$0xff] }
  0x6d   :  { %533 = vmatpush2.msra.mxu1 %v130_v16  ;;  %572 = vmatpush1.msra.mxu0 %v226_v17  ;;  %v240_v16 = vld [vmem:[#allocation2 + $0x6b0] sm:$0xff]  ;;  %v42_v17 = vld [vmem:[#allocation2 + $0x80] sm:$0xff] }
  0x6e   :  { %534 = vmatprep.subr.mxu1 %v125_v18  ;;  %573 = vmatprep.subr.mxu0 %v221_v19  ;;  %v235_v18 = vld [vmem:[#allocation2 + $0x688] sm:$0xff]  ;;  %v37_v19 = vld [vmem:[#allocation2 + $0x58] sm:$0xff] }
  0x6f   :  { %535 = vmatpush2.msra.mxu1 %v124_v20  ;;  %536 = vmatprep.mubr.f32.mxu1 %v880_v13  ;;  %v234_v20 = vld [vmem:[#allocation2 + $0x680] sm:$0xff] }
  0x70   :  { %574 = vmatpush1.msra.mxu0 %v220_v21  ;;  %607 = vmatprep.mubr.f32.mxu0 %v843_v0  ;;  %v36_v21 = vld [vmem:[#allocation2 + $0x50] sm:$0xff] }
  0x71   :  { %537 = vmatmul.mubr.f32.vlgmr.msra.gmra.mxu1 %v883_v15  ;;  %608 = vmatmul.mubr.f32.vlgmr.msra.gmra.mxu0 %v874_v8 }
  0x72   :  { %614 = vmatprep.subr.mxu0 %v121_v22  ;;  %685 = vmatprep.subr.mxu1 %v313_v23  ;;  %v229_v22 = vld [vmem:[#allocation2 + $0x658] sm:$0xff]  ;;  %v228_v23 = vld [vmem:[#allocation2 + $0x650] sm:$0xff] }
  0x73   :  { %615 = vmatpush1.msra.mxu0 %v120_v1  ;;  %686 = vmatpush1.msra.mxu1 %v312_v25  ;;  %v31_v1 = vld [vmem:[#allocation2 + $0x28] sm:$0xff] }
  0x74   :  { %616 = vmatprep.subr.mxu0 %v115_v24  ;;  %687 = vmatprep.subr.mxu1 %v307_v27  ;;  %v30_v24 = vld [vmem:[#allocation2 + $0x20] sm:$0xff]  ;;  %v223_v25 = vld [vmem:[#allocation2 + $0x628] sm:$0xff] }
  0x75   :  { %617 = vmatpush1.msra.mxu0 %v114_v26  ;;  %688 = vmatpush1.msra.mxu1 %v306_v29  ;;  %v217_v26 = vld [vmem:[#allocation2 + $0x5f8] sm:$0xff]  ;;  %v222_v27 = vld [vmem:[#allocation2 + $0x620] sm:$0xff]  ;;  %v211_v29 = vld [vmem:[#allocation2 + $0x5c8] sm:$0xff] }
  0x76   :  { %618 = vmatprep.subr.mxu0 %v109_v28  ;;  %689 = vmatprep.subr.mxu1 %v301_v31  ;;  %v216_v28 = vld [vmem:[#allocation2 + $0x5f0] sm:$0xff]  ;;  %v205_v31 = vld [vmem:[#allocation2 + $0x598] sm:$0xff] }
  0x77   :  { %619 = vmatpush1.msra.mxu0 %v108_v30  ;;  %690 = vmatpush1.msra.mxu1 %v300_v33  ;;  %v210_v30 = vld [vmem:[#allocation2 + $0x5c0] sm:$0xff]  ;;  %v199_v33 = vld [vmem:[#allocation2 + $0x568] sm:$0xff] }
  0x78   :  { %620 = vmatprep.subr.mxu0 %v103_v32  ;;  %691 = vmatprep.subr.mxu1 %v295_v35  ;;  %v204_v32 = vld [vmem:[#allocation2 + $0x590] sm:$0xff]  ;;  %v193_v35 = vld [vmem:[#allocation2 + $0x538] sm:$0xff] }
  0x79   :  { %621 = vmatpush1.msra.mxu0 %v102_v34  ;;  %692 = vmatpush1.msra.mxu1 %v294_v37  ;;  %v198_v34 = vld [vmem:[#allocation2 + $0x560] sm:$0xff]  ;;  %v187_v37 = vld [vmem:[#allocation2 + $0x508] sm:$0xff] }
  0x7a   :  { %622 = vmatprep.subr.mxu0 %v97_v36  ;;  %693 = vmatprep.subr.mxu1 %v289_v39  ;;  %v192_v36 = vld [vmem:[#allocation2 + $0x530] sm:$0xff] }
  0x7b   :  { %623 = vmatpush1.msra.mxu0 %v96_v38  ;;  %694 = vmatpush1.msra.mxu1 %v288_v41  ;;  %v186_v38 = vld [vmem:[#allocation2 + $0x500] sm:$0xff]  ;;  %v180_v39 = vld [vmem:[#allocation2 + $0x4d0] sm:$0xff] }
  0x7c   :  { %624 = vmatprep.subr.mxu0 %v91_v40  ;;  %695 = vmatprep.subr.mxu1 %v283_v44  ;;  %v174_v40 = vld [vmem:[#allocation2 + $0x4a0] sm:$0xff]  ;;  %v168_v41 = vld [vmem:[#allocation2 + $0x470] sm:$0xff] }
  0x7d   :  { %625 = vmatpush1.msra.mxu0 %v90_v42  ;;  %696 = vmatpush1.msra.mxu1 %v282_v46  ;;  %v163_v42 = vld [vmem:[#allocation2 + $0x448] sm:$0xff]  ;;  %v162_v44 = vld [vmem:[#allocation2 + $0x440] sm:$0xff]  ;;  %v156_v46 = vld [vmem:[#allocation2 + $0x410] sm:$0xff] }
  0x7e   :  { %626 = vmatprep.subr.mxu0 %v85_v45  ;;  %697 = vmatprep.subr.mxu1 %v277_v48  ;;  %v157_v45 = vld [vmem:[#allocation2 + $0x418] sm:$0xff]  ;;  %v150_v48 = vld [vmem:[#allocation2 + $0x3e0] sm:$0xff] }
  0x7f   :  { %627 = vmatpush1.msra.mxu0 %v84_v47  ;;  %698 = vmatpush1.msra.mxu1 %v276_v50  ;;  %v151_v47 = vld [vmem:[#allocation2 + $0x3e8] sm:$0xff]  ;;  %v144_v50 = vld [vmem:[#allocation2 + $0x3b0] sm:$0xff] }
  0x80   :  { %628 = vmatprep.subr.mxu0 %v79_v49  ;;  %699 = vmatprep.subr.mxu1 %v271_v53  ;;  %v145_v49 = vld [vmem:[#allocation2 + $0x3b8] sm:$0xff]  ;;  %v138_v53 = vld [vmem:[#allocation2 + $0x380] sm:$0xff] }
  0x81   :  { %629 = vmatpush1.msra.mxu0 %v78_v51  ;;  %700 = vmatpush1.msra.mxu1 %v270_v55  ;;  %v139_v51 = vld [vmem:[#allocation2 + $0x388] sm:$0xff]  ;;  %v132_v55 = vld [vmem:[#allocation2 + $0x350] sm:$0xff] }
  0x82   :  { %630 = vmatprep.subr.mxu0 %v73_v54  ;;  %701 = vmatprep.subr.mxu1 %v265_v57  ;;  %v133_v54 = vld [vmem:[#allocation2 + $0x358] sm:$0xff]  ;;  %v126_v57 = vld [vmem:[#allocation2 + $0x320] sm:$0xff] }
  0x83   :  { %631 = vmatpush1.msra.mxu0 %v72_v56  ;;  %702 = vmatpush1.msra.mxu1 %v264_v59  ;;  %v127_v56 = vld [vmem:[#allocation2 + $0x328] sm:$0xff] }
  0x84   :  { %632 = vmatprep.subr.mxu0 %v67_v58  ;;  %703 = vmatprep.subr.mxu1 %v259_v61 }
  0x85   :  { %633 = vmatpush1.msra.mxu0 %v66_v60  ;;  %704 = vmatpush1.msra.mxu1 %v258_v63 }
  0x86   :  { %634 = vmatprep.subr.mxu0 %v61_v62  ;;  %705 = vmatprep.subr.mxu1 %v253_v3 }
  0x87   :  { %635 = vmatpush1.msra.mxu0 %v60_v2  ;;  %706 = vmatpush1.msra.mxu1 %v252_v5 }
  0x88   :  { %636 = vmatprep.subr.mxu0 %v55_v4  ;;  %707 = vmatprep.subr.mxu1 %v247_v7  ;;  %v844_v4 = vmov 1966171168  }
  0x89   :  { %637 = vmatpush1.msra.mxu0 %v54_v6  ;;  %708 = vmatpush1.msra.mxu1 %v246_v10  ;;  %v766_v5 = vunpack.c.l.s4 %v844_v4 }
  0x8a   :  { %638 = vmatprep.subr.mxu0 %v49_v9  ;;  %709 = vmatprep.subr.mxu1 %v241_v12 }
  0x8b   :  { %639 = vmatpush1.msra.mxu0 %v48_v11  ;;  %710 = vmatpush1.msra.mxu1 %v240_v16  ;;  %v767_v11 = vunpack.c.0.s8 %v766_v5 }
  0x8c   :  { %640 = vmatprep.subr.mxu0 %v43_v14  ;;  %711 = vmatprep.subr.mxu1 %v235_v18 }
  0x8d   :  { %641 = vmatpush1.msra.mxu0 %v42_v17  ;;  %712 = vmatpush1.msra.mxu1 %v234_v20 }
  0x8e   :  { %642 = vmatprep.subr.mxu0 %v37_v19  ;;  %713 = vmatprep.subr.mxu1 %v229_v22 }
  0x8f   :  { %643 = vmatpush1.msra.mxu0 %v36_v21  ;;  %714 = vmatpush1.msra.mxu1 %v228_v23 }
  0x90   :  { %644 = vmatprep.subr.mxu0 %v31_v1  ;;  %715 = vmatprep.subr.mxu1 %v223_v25 }
  0x91   :  { %645 = vmatpush1.msra.mxu0 %v30_v24  ;;  %716 = vmatpush1.msra.mxu1 %v222_v27 }
  0x92   :  { %646 = vmatprep.subr.mxu0 %v217_v26  ;;  %749 = vmatprep.mubr.f32.mxu1 %v843_v0  ;;  %v181_v0 = vld [vmem:[#allocation2 + $0x4d8] sm:$0xff] }
  0x93   :  { %647 = vmatpush2.msra.mxu0 %v216_v28  ;;  %750 = vmatmul.mubr.f32.vlgmr.msra.gmra.mxu1 %v874_v8  ;;  %v175_v8 = vld [vmem:[#allocation2 + $0x4a8] sm:$0xff] }
  0x94   :  { %648 = vmatprep.subr.mxu0 %v211_v29  ;;  %678 = vmatprep.mubr.f32.mxu0 %v880_v13  ;;  %v169_v13 = vld [vmem:[#allocation2 + $0x478] sm:$0xff] }
  0x95   :  { %649 = vmatpush2.msra.mxu0 %v210_v30 }
  0x96   :  { %650 = vmatprep.subr.mxu0 %v205_v31 }
  0x97   :  { %651 = vmatpush2.msra.mxu0 %v204_v32 }
  0x98   :  { %652 = vmatprep.subr.mxu0 %v199_v33 }
  0x99   :  { %653 = vmatpush2.msra.mxu0 %v198_v34 }
  0x9a   :  { %654 = vmatprep.subr.mxu0 %v193_v35 }
  0x9b   :  { %655 = vmatpush2.msra.mxu0 %v192_v36 }
  0x9c   :  { %656 = vmatprep.subr.mxu0 %v187_v37 }
  0x9d   :  { %657 = vmatpush2.msra.mxu0 %v186_v38 }
  0x9e   :  { %658 = vmatprep.subr.mxu0 %v181_v0 }
  0x9f   :  { %659 = vmatpush2.msra.mxu0 %v180_v39 }
  0xa0   :  { %660 = vmatprep.subr.mxu0 %v175_v8 }
  0xa1   :  { %661 = vmatpush2.msra.mxu0 %v174_v40 }
  0xa2   :  { %662 = vmatprep.subr.mxu0 %v169_v13 }
  0xa3   :  { %663 = vmatpush2.msra.mxu0 %v168_v41 }
  0xa4   :  { %664 = vmatprep.subr.mxu0 %v163_v42 }
  0xa5   :  { %665 = vmatpush2.msra.mxu0 %v162_v44 }
  0xa6   :  { %666 = vmatprep.subr.mxu0 %v157_v45 }
  0xa7   :  { %667 = vmatpush2.msra.mxu0 %v156_v46 }
  0xa8   :  { %668 = vmatprep.subr.mxu0 %v151_v47 }
  0xa9   :  { %669 = vmatpush2.msra.mxu0 %v150_v48 }
  0xaa   :  { %670 = vmatprep.subr.mxu0 %v145_v49 }
  0xab   :  { %671 = vmatpush2.msra.mxu0 %v144_v50 }
  0xac   :  { %672 = vmatprep.subr.mxu0 %v139_v51 }
  0xad   :  { %673 = vmatpush2.msra.mxu0 %v138_v53 }
  0xae   :  { %674 = vmatprep.subr.mxu0 %v133_v54 }
  0xaf   :  { %675 = vmatpush2.msra.mxu0 %v132_v55 }
  0xb0   :  { %676 = vmatprep.subr.mxu0 %v127_v56 }
  0xb1   :  { %677 = vmatpush2.msra.mxu0 %v126_v57 }
  0xb2   :  { %679 = vmatmul.mubr.f32.vlgmr.msra.gmra.mxu0 %v883_v15  ;;  %v770_v15 = vsub.s32 %v767_v11, %v865_v52 }
  0xf0   :  { %v467_v58 = vpop.f32.mrf.mxu1 }
  0xf2   :  { %v469_v60 = vpop.f32.mrf.mxu1 }
 0x10f   :  { %v396_v59 = vpop.f32.mrf.mxu0 }
 0x110   :  { %v468_v9 = vadd.f32 %v467_v58, %v396_v59 }
 0x111   :  { %v398_v61 = vpop.f32.mrf.mxu0 }
 0x112   :  { %v470_v10 = vadd.f32 %v469_v60, %v398_v61 }
 0x114   :  { %v762_v16 = vcombine.low %v468_v9, %v470_v10 }
 0x116   :  { %v771_v21 = vrot.slane %v762_v16, %v770_v15 }
 0x131   :  { %v538_v62 = vpop.f32.mrf.mxu1  ;;  %v609_v63 = vpop.f32.mrf.mxu0 }
 0x132   :  { %v610_v6 = vadd.f32 %v609_v63, %v538_v62 }
 0x133   :  { %v540_v2 = vpop.f32.mrf.mxu1  ;;  %v611_v3 = vpop.f32.mrf.mxu0 }
 0x134   :  { %v612_v7 = vadd.f32 %v611_v3, %v540_v2 }
 0x136   :  { %v763_v12 = vcombine.low %v610_v6, %v612_v7 }
 0x138   :  { %v778_v18 = vrot.slane %v763_v12, %v770_v15 }
 0x13a   :  { %v786_v23 = vcombine.low %v771_v21, %v778_v18 }
 0x13c   :  { %v793_v26 = vrot.slane %v786_v23, %v770_v15 }
 0x153   :  { %v751_v14 = vpop.f32.mrf.mxu1 }
 0x155   :  { %v753_v19 = vpop.f32.mrf.mxu1 }
 0x172   :  { %v680_v17 = vpop.f32.mrf.mxu0 }
 0x173   :  { %v752_v22 = vadd.f32 %v751_v14, %v680_v17 }
 0x174   :  { %v682_v20 = vpop.f32.mrf.mxu0 }
 0x175   :  { %v754_v1 = vadd.f32 %v753_v19, %v682_v20 }
 0x177   :  { %v764_v24 = vcombine.low %v752_v22, %v754_v1 }
 0x179   :  { %v785_v25 = vrot.slane %v764_v24, %v770_v15 }
 0x17b   :  { %v800_v27 = vrot.slane %v785_v25, %v770_v15 }
 0x17d   :  { %v801_v28 = vcombine.low %v793_v26, %v800_v27 }
 0x17f   :  { %807 = vst.msk [vmem:[%s902_s2] sm:$0x3f] %vm805_vm0, %v801_v28 }
 0x180   :  { %812 = vsyncpa [#allocation3], 1 }

</bundles_post_ra>
